<compile_context>
chip_gen: v6e
topology: v6e:2x2x1
jax: 0.10.0
libtpu: 0.0.40
codegen_flags: <defaults>
</compile_context>

<pallas_src>
import functools

import jax
import jax.numpy as jnp
from jax.experimental import pallas as pl
from jax.experimental.pallas import tpu as pltpu

HIDDEN = 64          # Relationshipness embedding dim per branch
PACKED = 2 * HIDDEN  # embedding width after block-diagonal weight packing (= 128)


# ---------------------------------------------------------------------------
# Pallas kernel 1: one-shot packed projections  E_s = xp @ W_s + b_s, E_o = xp @ W_o + b_o
# ---------------------------------------------------------------------------
def _proj_kernel(xp_ref, ws_ref, bs_ref, wo_ref, bo_ref, es_ref, eo_ref):
    x = xp_ref[...]
    e_s = jnp.dot(x, ws_ref[...], preferred_element_type=jnp.float32) + bs_ref[...]
    e_o = jnp.dot(x, wo_ref[...], preferred_element_type=jnp.float32) + bo_ref[...]
    es_ref[...] = e_s.astype(es_ref.dtype)
    eo_ref[...] = e_o.astype(eo_ref.dtype)


def project_embeddings_pallas(xp, w_s, b_s, w_o, b_o, *, tile):
    """xp: (Np, C+6) bf16  ->  E_s, E_o: (Np, 128) bf16 (computed once, not per tile)."""
    Np, Cp = xp.shape
    return pl.pallas_call(
        _proj_kernel,
        out_shape=(jax.ShapeDtypeStruct((Np, PACKED), jnp.bfloat16),
                   jax.ShapeDtypeStruct((Np, PACKED), jnp.bfloat16)),
        grid=(Np // tile,),
        in_specs=[
            pl.BlockSpec((tile, Cp), lambda i: (i, 0)),      # input row slab
            pl.BlockSpec((Cp, PACKED), lambda i: (0, 0)),    # packed subject weights
            pl.BlockSpec((1, PACKED), lambda i: (0, 0)),     # packed subject bias
            pl.BlockSpec((Cp, PACKED), lambda i: (0, 0)),    # packed object weights
            pl.BlockSpec((1, PACKED), lambda i: (0, 0)),     # packed object bias
        ],
        out_specs=(pl.BlockSpec((tile, PACKED), lambda i: (i, 0)),
                   pl.BlockSpec((tile, PACKED), lambda i: (i, 0))),
        compiler_params=pltpu.CompilerParams(dimension_semantics=("parallel",)),
    )(xp, w_s, b_s, w_o, b_o)


# ---------------------------------------------------------------------------
# Pallas kernel 2: one (tile, tile) tile of masked raw relationshipness logits.
# ---------------------------------------------------------------------------
def _relness_tile_kernel(n_ref, es_ref, eo_ref, out_ref, *, tile):
    # NT contraction of the 128-wide embeddings directly on the MXU (no transpose).
    s = jax.lax.dot_general(
        es_ref[...], eo_ref[...],
        dimension_numbers=(((1,), (1,)), ((), ())),
        preferred_element_type=jnp.float32)
    # Fused validity mask (off-diagonal, non-padded pairs) — free VPU work in an
    # HBM-writeback-bound kernel; removes the wrapper's full-map read-modify-write.
    n = n_ref[0]
    row = pl.program_id(0) * tile + jax.lax.broadcasted_iota(jnp.int32, (tile, tile), 0)
    col = pl.program_id(1) * tile + jax.lax.broadcasted_iota(jnp.int32, (tile, tile), 1)
    valid = (row < n) & (col < n) & (row != col)
    out_ref[...] = jnp.where(valid, s, -jnp.inf).astype(out_ref.dtype)


def relationshipness_scores_pallas(n_arr, e_s, e_o, *, tile):
    """Masked (off-diagonal, non-padded) raw relationshipness logits, (Np, Np) bf16."""
    Np = e_s.shape[0]
    grid_m = Np // tile
    kernel = functools.partial(_relness_tile_kernel, tile=tile)
    cost = pl.CostEstimate(
        flops=2 * Np * Np * PACKED,
        transcendentals=0,
        bytes_accessed=Np * Np * 2 + 2 * grid_m * Np * PACKED * 2)
    return pl.pallas_call(
        kernel,
        out_shape=jax.ShapeDtypeStruct((Np, Np), jnp.bfloat16),
        grid_spec=pltpu.PrefetchScalarGridSpec(
            num_scalar_prefetch=1,                            # n_arr -> SMEM
            grid=(grid_m, grid_m),
            in_specs=[
                pl.BlockSpec((tile, PACKED), lambda i, j, n: (i, 0)),  # subject rows
                pl.BlockSpec((tile, PACKED), lambda i, j, n: (j, 0)),  # object rows
            ],
            out_specs=pl.BlockSpec((tile, tile), lambda i, j, n: (i, j)),
        ),
        compiler_params=pltpu.CompilerParams(
            dimension_semantics=("parallel", "parallel")),    # shards across TCs on v7x
        cost_estimate=cost,
    )(n_arr, e_s, e_o)


# ---------------------------------------------------------------------------
# JAX glue reproducing RelPN._relpnsample_test (single image, FILTER_NON_OVERLAP=False)
# ---------------------------------------------------------------------------
def box_pos_encode(bboxes, imsize):
    # TODO(synk): the exact boxes_encode() lives in relationshipness.py (not provided);
    #             standard 6-d normalized box encoding (x1/W, y1/H, x2/W, y2/H, w/W, h/H) used.
    W, H = imsize
    x1, y1, x2, y2 = bboxes[:, 0], bboxes[:, 1], bboxes[:, 2], bboxes[:, 3]
    pos = jnp.stack([x1 / W, y1 / H, x2 / W, y2 / H,
                     (x2 - x1) / W, (y2 - y1) / H], axis=1)
    return pos.astype(jnp.float32)


def _blockdiag(w_top, w_bot):
    """blockdiag((C,H), (P,H)) -> (C+P, 2H): [x | p] @ W == [x@w_top | p@w_bot]."""
    c, h = w_top.shape
    p, h2 = w_bot.shape
    top = jnp.concatenate([w_top, jnp.zeros((c, h2), w_top.dtype)], axis=1)
    bot = jnp.concatenate([jnp.zeros((p, h), w_bot.dtype), w_bot], axis=1)
    return jnp.concatenate([top, bot], axis=0)


def _choose_tile(N):
    """Lane-dense square output tile: large enough to amortize ~0.35us/step overhead,
    keeps >= 2 blocks per 'parallel' axis when N > 128 (v7x megacore), capped at 512
    so double-buffered bf16 output tiles stay well inside scoped VMEM on all chips."""
    if N <= 256:
        return 128
    np128 = ((N + 127) // 128) * 128
    return int(min(512, max(128, (np128 // 2 // 128) * 128)))


@functools.partial(jax.jit, static_argnames=("imsize", "post_relpn_proposals"))
def relpn_test_forward(obj_logits, obj_bboxes, params, *, imsize, post_relpn_proposals):
    """RelPN.forward (eval mode) for one image: relationshipness scoring over all
    subject-object pairs + off-diagonal top-K pair sampling."""
    N, C = obj_logits.shape
    K = post_relpn_proposals
    # TODO(synk): as in the reference, K must be <= N*(N-1); larger K would select
    #             masked (-inf) diagonal/padded entries and yield bogus pairs.

    # Packed projection input: [class logits | 6-d box pos encoding]  -> (N, C+6)
    pos = box_pos_encode(obj_bboxes, imsize)
    xp = jnp.concatenate([obj_logits, pos], axis=1)

    # Pad the proposal axis to a lane-dense tile multiple.
    tile = _choose_tile(N)
    Np = ((N + tile - 1) // tile) * tile
    xp_p = jnp.pad(xp, ((0, Np - N), (0, 0))).astype(jnp.bfloat16)

    # Block-diagonal weight packing: 4 Linears -> 2 matmuls with a 128-wide embedding.
    w_s = _blockdiag(params["w_subj"], params["w_spos"]).astype(jnp.bfloat16)
    w_o = _blockdiag(params["w_obj"], params["w_opos"]).astype(jnp.bfloat16)
    b_s = jnp.concatenate([params["b_subj"], params["b_spos"]], axis=1).astype(jnp.float32)
    b_o = jnp.concatenate([params["b_obj"], params["b_opos"]], axis=1).astype(jnp.float32)

    # Hoisted projections: E_s, E_o computed once (not per output tile).
    e_s, e_o = project_embeddings_pallas(xp_p, w_s, b_s, w_o, b_o, tile=tile)

    # Pallas hot path: masked raw relationshipness logits (Np, Np), bf16.
    n_arr = jnp.array([N], jnp.int32)
    scores = relationshipness_scores_pallas(n_arr, e_s, e_o, tile=tile)

    # Two-stage exact top-K: per-row top-K (<= K candidates per row can reach the
    # global top-K), then global top-K over the Np*k_row candidate matrix.
    k_row = min(K, Np)
    row_vals, row_idx = jax.lax.top_k(scores, k_row)          # (Np, k_row)
    vals, cand = jax.lax.top_k(row_vals.reshape(-1), K)
    idx_subj = (cand // k_row).astype(jnp.int32)
    idx_obj = row_idx.reshape(-1)[cand].astype(jnp.int32)

    relness_topk = jax.nn.sigmoid(vals.astype(jnp.float32))   # sigmoid deferred past top-K
    sel_box_pairs = jnp.concatenate([obj_bboxes[idx_subj], obj_bboxes[idx_obj]], axis=1)
    sel_idx_pairs = jnp.stack([idx_subj, idx_obj], axis=1)
    return sel_box_pairs, sel_idx_pairs, relness_topk


# ---------------------------------------------------------------------------
# Deterministic parameter init (nn.Linear-style uniform) and demo run
# ---------------------------------------------------------------------------
def _linear_init(key, fan_in, fan_out):
    kw, kb = jax.random.split(key)
    bound = 1.0 / float(fan_in) ** 0.5
    w = jax.random.uniform(kw, (fan_in, fan_out), jnp.float32, -bound, bound)
    b = jax.random.uniform(kb, (1, fan_out), jnp.float32, -bound, bound)
    return w, b


if __name__ == "__main__":
    N = 16          # number of proposals per image
    C = 32          # MODEL.ROI_BOX_HEAD.NUM_CLASSES (small synthetic value)
    K = 32          # MODEL.ROI_RELATION_HEAD.POST_RELPN_PREPOSALS (<= N*N - N)
    imsize = (64.0, 48.0)  # (image width, image height)

    key = jax.random.PRNGKey(0)
    k_logit, k_xy, k_wh, kw0, kw1, kw2, kw3 = jax.random.split(key, 7)

    obj_logits = jax.random.normal(k_logit, (N, C), jnp.float32)      # 'scores_all' field
    xy1 = jax.random.uniform(k_xy, (N, 2), jnp.float32, 0.0, 30.0)
    wh = jax.random.uniform(k_wh, (N, 2), jnp.float32, 4.0, 20.0)
    obj_bboxes = jnp.concatenate([xy1, xy1 + wh], axis=1)             # (N, 4) xyxy

    params = {}
    params["w_subj"], params["b_subj"] = _linear_init(kw0, C, HIDDEN)
    params["w_obj"], params["b_obj"] = _linear_init(kw1, C, HIDDEN)
    params["w_spos"], params["b_spos"] = _linear_init(kw2, 6, HIDDEN)
    params["w_opos"], params["b_opos"] = _linear_init(kw3, 6, HIDDEN)

    box_pairs, idx_pairs, relness_topk = relpn_test_forward(
        obj_logits, obj_bboxes, params, imsize=imsize, post_relpn_proposals=K)
    jax.block_until_ready((box_pairs, idx_pairs, relness_topk))

    assert box_pairs.shape == (K, 8)
    assert idx_pairs.shape == (K, 2)
    assert relness_topk.shape == (K,)
    assert bool(jnp.all(idx_pairs[:, 0] != idx_pairs[:, 1]))           # off-diagonal only
    assert bool(jnp.all((idx_pairs >= 0) & (idx_pairs < N)))           # no padded proposals
    assert bool(jnp.all((relness_topk >= 0.0) & (relness_topk <= 1.0)))
    print("KERNEL_OK")
</pallas_src>

<mosaic_0001>
module attributes {stable_mosaic.version = 11 : i64} {
  func.func @_proj_kernel(%arg0: i32, %arg1: memref<128x38xbf16, #tpu.memory_space<vmem>>, %arg2: memref<38x128xbf16, #tpu.memory_space<vmem>>, %arg3: memref<1x128xf32, #tpu.memory_space<vmem>>, %arg4: memref<38x128xbf16, #tpu.memory_space<vmem>>, %arg5: memref<1x128xf32, #tpu.memory_space<vmem>>, %arg6: memref<128x128xbf16, #tpu.memory_space<vmem>>, %arg7: memref<128x128xbf16, #tpu.memory_space<vmem>>) attributes {dimension_semantics = [#tpu.dimension_semantics<parallel>], iteration_bounds = array<i64: 1>, scalar_prefetch = 0 : i64, scratch_operands = 0 : i64, tpu.core_type = #tpu.core_type<tc>, window_params = [{transform_indices = @transform_0, window_bounds = array<i64: 128, 38>}, {pipeline_mode = #tpu.pipeline_mode<synchronous>, transform_indices = @transform_1, window_bounds = array<i64: 38, 128>}, {pipeline_mode = #tpu.pipeline_mode<synchronous>, transform_indices = @transform_2, window_bounds = array<i64: 1, 128>}, {pipeline_mode = #tpu.pipeline_mode<synchronous>, transform_indices = @transform_3, window_bounds = array<i64: 38, 128>}, {pipeline_mode = #tpu.pipeline_mode<synchronous>, transform_indices = @transform_4, window_bounds = array<i64: 1, 128>}, {transform_indices = @transform_5, window_bounds = array<i64: 128, 128>}, {transform_indices = @transform_6, window_bounds = array<i64: 128, 128>}]} {
    %c0 = arith.constant 0 : index
    %c0_0 = arith.constant 0 : index
    %0 = vector.load %arg1[%c0, %c0_0] : memref<128x38xbf16, #tpu.memory_space<vmem>>, vector<128x38xbf16>
    %c0_1 = arith.constant 0 : index
    %c0_2 = arith.constant 0 : index
    %1 = vector.load %arg2[%c0_1, %c0_2] : memref<38x128xbf16, #tpu.memory_space<vmem>>, vector<38x128xbf16>
    %cst = arith.constant dense<0.000000e+00> : vector<128x128xf32>
    %2 = tpu.matmul %0, %1, %cst {dimension_numbers = #tpu.dot_dimension_numbers<[1], [0], [0], [1], [0, 0, 1, 1], [], []>} : vector<128x38xbf16>, vector<38x128xbf16>, vector<128x128xf32> -> vector<128x128xf32>
    %c0_3 = arith.constant 0 : index
    %c0_4 = arith.constant 0 : index
    %3 = vector.load %arg3[%c0_3, %c0_4] : memref<1x128xf32, #tpu.memory_space<vmem>>, vector<1x128xf32>
    %4 = vector.broadcast %3 : vector<1x128xf32> to vector<128x128xf32>
    %5 = arith.addf %2, %4 : vector<128x128xf32>
    %c0_5 = arith.constant 0 : index
    %c0_6 = arith.constant 0 : index
    %6 = vector.load %arg4[%c0_5, %c0_6] : memref<38x128xbf16, #tpu.memory_space<vmem>>, vector<38x128xbf16>
    %cst_7 = arith.constant dense<0.000000e+00> : vector<128x128xf32>
    %7 = tpu.matmul %0, %6, %cst_7 {dimension_numbers = #tpu.dot_dimension_numbers<[1], [0], [0], [1], [0, 0, 1, 1], [], []>} : vector<128x38xbf16>, vector<38x128xbf16>, vector<128x128xf32> -> vector<128x128xf32>
    %c0_8 = arith.constant 0 : index
    %c0_9 = arith.constant 0 : index
    %8 = vector.load %arg5[%c0_8, %c0_9] : memref<1x128xf32, #tpu.memory_space<vmem>>, vector<1x128xf32>
    %9 = vector.broadcast %8 : vector<1x128xf32> to vector<128x128xf32>
    %10 = arith.addf %7, %9 : vector<128x128xf32>
    %11 = arith.truncf %5 : vector<128x128xf32> to vector<128x128xbf16>
    %c0_10 = arith.constant 0 : index
    %c0_11 = arith.constant 0 : index
    %12 = vector.load %arg6[%c0_10, %c0_11] : memref<128x128xbf16, #tpu.memory_space<vmem>>, vector<128x128xbf16>
    tpu.vector_store %arg6[%c0_10, %c0_11], %11 {strides = array<i32>} : memref<128x128xbf16, #tpu.memory_space<vmem>>, vector<128x128xbf16>,
    %13 = arith.truncf %10 : vector<128x128xf32> to vector<128x128xbf16>
    %c0_12 = arith.constant 0 : index
    %c0_13 = arith.constant 0 : index
    %14 = vector.load %arg7[%c0_12, %c0_13] : memref<128x128xbf16, #tpu.memory_space<vmem>>, vector<128x128xbf16>
    tpu.vector_store %arg7[%c0_12, %c0_13], %13 {strides = array<i32>} : memref<128x128xbf16, #tpu.memory_space<vmem>>, vector<128x128xbf16>,
    return
  }
  func.func @transform_0(%arg0: i32) -> (i32, i32) {
    %c0_i32 = arith.constant 0 : i32
    %c0_i32_0 = arith.constant 0 : i32
    return %arg0, %c0_i32 : i32, i32
  }
  func.func @transform_1(%arg0: i32) -> (i32, i32) {
    %c0_i32 = arith.constant 0 : i32
    %c0_i32_0 = arith.constant 0 : i32
    %c0_i32_1 = arith.constant 0 : i32
    return %c0_i32, %c0_i32_0 : i32, i32
  }
  func.func @transform_2(%arg0: i32) -> (i32, i32) {
    %c0_i32 = arith.constant 0 : i32
    %c0_i32_0 = arith.constant 0 : i32
    %c0_i32_1 = arith.constant 0 : i32
    return %c0_i32, %c0_i32_0 : i32, i32
  }
  func.func @transform_3(%arg0: i32) -> (i32, i32) {
    %c0_i32 = arith.constant 0 : i32
    %c0_i32_0 = arith.constant 0 : i32
    %c0_i32_1 = arith.constant 0 : i32
    return %c0_i32, %c0_i32_0 : i32, i32
  }
  func.func @transform_4(%arg0: i32) -> (i32, i32) {
    %c0_i32 = arith.constant 0 : i32
    %c0_i32_0 = arith.constant 0 : i32
    %c0_i32_1 = arith.constant 0 : i32
    return %c0_i32, %c0_i32_0 : i32, i32
  }
  func.func @transform_5(%arg0: i32) -> (i32, i32) {
    %c0_i32 = arith.constant 0 : i32
    %c0_i32_0 = arith.constant 0 : i32
    return %arg0, %c0_i32 : i32, i32
  }
  func.func @transform_6(%arg0: i32) -> (i32, i32) {
    %c0_i32 = arith.constant 0 : i32
    %c0_i32_0 = arith.constant 0 : i32
    return %arg0, %c0_i32 : i32, i32
  }
}

module attributes {stable_mosaic.version = 11 : i64} {
  func.func @_relness_tile_kernel(%arg0: i32, %arg1: i32, %arg2: memref<1xi32, #tpu.memory_space<smem>>, %arg3: memref<128x128xbf16, #tpu.memory_space<vmem>>, %arg4: memref<128x128xbf16, #tpu.memory_space<vmem>>, %arg5: memref<128x128xbf16, #tpu.memory_space<vmem>>) attributes {dimension_semantics = [#tpu.dimension_semantics<parallel>, #tpu.dimension_semantics<parallel>], iteration_bounds = array<i64: 1, 1>, scalar_prefetch = 1 : i64, scratch_operands = 0 : i64, tpu.core_type = #tpu.core_type<tc>, window_params = [{transform_indices = @transform_0, window_bounds = array<i64: 128, 128>}, {transform_indices = @transform_1, window_bounds = array<i64: 128, 128>}, {transform_indices = @transform_2, window_bounds = array<i64: 128, 128>}]} {
    %c0 = arith.constant 0 : index
    %c0_0 = arith.constant 0 : index
    %0 = vector.load %arg3[%c0, %c0_0] : memref<128x128xbf16, #tpu.memory_space<vmem>>, vector<128x128xbf16>
    %c0_1 = arith.constant 0 : index
    %c0_2 = arith.constant 0 : index
    %1 = vector.load %arg4[%c0_1, %c0_2] : memref<128x128xbf16, #tpu.memory_space<vmem>>, vector<128x128xbf16>
    %cst = arith.constant dense<0.000000e+00> : vector<128x128xf32>
    %2 = tpu.matmul %0, %1, %cst {dimension_numbers = #tpu.dot_dimension_numbers<[1], [1], [0], [0], [0, 0, 1, 0], [], []>} : vector<128x128xbf16>, vector<128x128xbf16>, vector<128x128xf32> -> vector<128x128xf32>
    %c0_3 = arith.constant 0 : index
    %3 = memref.load %arg2[%c0_3] : memref<1xi32, #tpu.memory_space<smem>>
    %c128_i32 = arith.constant 128 : i32
    %4 = arith.muli %arg0, %c128_i32 : i32
    %5 = tpu.iota {dimensions = array<i32: 0>} : vector<128x128xi32>
    %6 = vector.broadcast %4 : i32 to vector<128x128xi32>
    %7 = arith.addi %6, %5 : vector<128x128xi32>
    %c128_i32_4 = arith.constant 128 : i32
    %8 = arith.muli %arg1, %c128_i32_4 : i32
    %9 = tpu.iota {dimensions = array<i32: 1>} : vector<128x128xi32>
    %10 = vector.broadcast %8 : i32 to vector<128x128xi32>
    %11 = arith.addi %10, %9 : vector<128x128xi32>
    %12 = vector.broadcast %3 : i32 to vector<128x128xi32>
    %13 = arith.cmpi slt, %7, %12 : vector<128x128xi32>
    %14 = vector.broadcast %3 : i32 to vector<128x128xi32>
    %15 = arith.cmpi slt, %11, %14 : vector<128x128xi32>
    %16 = arith.andi %13, %15 : vector<128x128xi1>
    %17 = arith.cmpi ne, %7, %11 : vector<128x128xi32>
    %18 = arith.andi %16, %17 : vector<128x128xi1>
    %cst_5 = arith.constant 0xFF800000 : f32
    %19 = vector.broadcast %cst_5 : f32 to vector<128x128xf32>
    %20 = arith.select %18, %2, %19 : vector<128x128xi1>, vector<128x128xf32>
    %21 = arith.truncf %20 : vector<128x128xf32> to vector<128x128xbf16>
    %c0_6 = arith.constant 0 : index
    %c0_7 = arith.constant 0 : index
    %22 = vector.load %arg5[%c0_6, %c0_7] : memref<128x128xbf16, #tpu.memory_space<vmem>>, vector<128x128xbf16>
    tpu.vector_store %arg5[%c0_6, %c0_7], %21 {strides = array<i32>} : memref<128x128xbf16, #tpu.memory_space<vmem>>, vector<128x128xbf16>,
    return
  }
  func.func @transform_0(%arg0: i32, %arg1: i32, %arg2: memref<1xi32, #tpu.memory_space<smem>>) -> (i32, i32) {
    %c0_i32 = arith.constant 0 : i32
    %c0_i32_0 = arith.constant 0 : i32
    return %arg0, %c0_i32 : i32, i32
  }
  func.func @transform_1(%arg0: i32, %arg1: i32, %arg2: memref<1xi32, #tpu.memory_space<smem>>) -> (i32, i32) {
    %c0_i32 = arith.constant 0 : i32
    %c0_i32_0 = arith.constant 0 : i32
    return %arg1, %c0_i32 : i32, i32
  }
  func.func @transform_2(%arg0: i32, %arg1: i32, %arg2: memref<1xi32, #tpu.memory_space<smem>>) -> (i32, i32) {
    %c0_i32 = arith.constant 0 : i32
    return %arg0, %arg1 : i32, i32
  }
}

</mosaic_0001>

<bundles_post_ra>
// kernel: relpn_test_forward.2
= control target key start
LH: loop header
LB: loop body
LE: loop exit
PB: predicated region body
PF: predicated region fallthrough
CT: control target
= control target key end

     0   :  { %vm131_vm0 = vcmask 1042432   ;;  %vm106_vm1 = vcmask 310272   ;;  %s982_s1 = inlined_call_operand.vmem [shape: bf16[38,128], index: 1, kind: input, shape index: {}]   ;;  %s983_s3 = inlined_call_operand.vmem [shape: bf16[38,128], index: 3, kind: input, shape index: {}]   ;;  %s984_s0 = inlined_call_operand.vmem [shape: bf16[128,38], index: 0, kind: input, shape index: {}]   ;;  %s985_s2 = inlined_call_operand.vmem [shape: f32[1,128], index: 2, kind: input, shape index: {}]   ;;  %s986_s4 = inlined_call_operand.vmem [shape: f32[1,128], index: 4, kind: input, shape index: {}]   ;;  %s987_s5 = inlined_call_operand.vmem [shape: bf16[128,128], index: 5, kind: output, shape index: {0}]   ;;  %s988_s6 = inlined_call_operand.vmem [shape: bf16[128,128], index: 6, kind: output, shape index: {1}]  }
   0x1   :  { %v785_v0 = vld [vmem:[%s982_s1 + $0x10] ss:$0 sps:$4 sm:$0x77]   ;;  %v787_v1 = vld [vmem:[%s982_s1 + $0x8] sm:$0xff]   ;;  %v789_v5 = vld [vmem:[%s982_s1] sm:$0xff]  }
   0x2   :  { %v786_v2 = vld [vmem:[%s983_s3 + $0x10] ss:$0 sps:$4 sm:$0x77]   ;;  %v788_v3 = vld [vmem:[%s983_s3 + $0x8] sm:$0xff]   ;;  %783 = vmatprep.subr.msk.bf16.mxu0 %vm131_vm0, %v785_v0  ;;  %v133_v4 = vsel %vm131_vm0, %v785_v0, 0  ;;  %v790_v7 = vld [vmem:[%s983_s3] sm:$0xff]  }
   0x3   :  { %784 = vmatprep.subr.msk.bf16.mxu1 %vm131_vm0, %v786_v2  ;;  %740 = vmatpush3.bf16.msra.mxu0 %v133_v4  ;;  %v260_v6 = vsel %vm131_vm0, %v786_v2, 0  ;;  %v791_v8 = vld [vmem:[%s984_s0] sm:$0xff]   ;;  %v792_v9 = vld [vmem:[%s984_s0 + $0x8] sm:$0xff]   ;;  %v793_v10 = vld [vmem:[%s984_s0 + $0x10] sm:$0xff]  }
   0x4   :  { %762 = vmatpush3.bf16.msra.mxu1 %v260_v6  ;;  %741 = vmatprep.subr.bf16.mxu0 %v787_v1  ;;  %v794_v11 = vld [vmem:[%s984_s0 + $0x18] sm:$0xff]   ;;  %v795_v12 = vld [vmem:[%s984_s0 + $0x20] sm:$0xff]   ;;  %v796_v13 = vld [vmem:[%s984_s0 + $0x28] sm:$0xff]  }
   0x5   :  { %763 = vmatprep.subr.bf16.mxu1 %v788_v3  ;;  %745 = vmatprep.mubr.msk.bf16.mxu0 %vm106_vm1, %v791_v8  ;;  %v797_v14 = vld [vmem:[%s984_s0 + $0x30] sm:$0xff]   ;;  %v798_v15 = vld [vmem:[%s984_s0 + $0x38] sm:$0xff]   ;;  %v895_v18 = vld [vmem:[%s985_s2] ss:$0 sm:$0xff] }
   0x6   :  { %767 = vmatprep.mubr.msk.bf16.mxu1 %vm106_vm1, %v791_v8  ;;  %v900_v20 = vld [vmem:[%s986_s4] ss:$0 sm:$0xff] }
   0x7   :  { %742 = vmatpush3.bf16.msra.mxu0 %v787_v1 }
   0x8   :  { %764 = vmatpush3.bf16.msra.mxu1 %v788_v3  ;;  %743 = vmatprep.subr.bf16.mxu0 %v789_v5 }
   0x9   :  { %765 = vmatprep.subr.bf16.mxu1 %v790_v7 }
   0xb   :  { %744 = vmatpush3.bf16.msra.mxu0 %v789_v5 }
   0xc   :  { %766 = vmatpush3.bf16.msra.mxu1 %v790_v7 }
   0xe   :  { %746 = vmatmul.mubr.msk.bf16.vlgmr.msra.gmra.mxu0 %vm106_vm1, %v792_v9 }
   0xf   :  { %768 = vmatmul.mubr.msk.bf16.vlgmr.msra.gmra.mxu1 %vm106_vm1, %v792_v9  ;;  %749 = vmatprep.mubr.msk.bf16.mxu0 %vm106_vm1, %v793_v10 }
  0x10   :  { %771 = vmatprep.mubr.msk.bf16.mxu1 %vm106_vm1, %v793_v10 }
  0x16   :  { %750 = vmatmul.mubr.msk.bf16.gmra.mxu0 %vm106_vm1, %v794_v11 }
  0x17   :  { %772 = vmatmul.mubr.msk.bf16.gmra.mxu1 %vm106_vm1, %v794_v11  ;;  %753 = vmatprep.mubr.msk.bf16.mxu0 %vm106_vm1, %v795_v12 }
  0x18   :  { %775 = vmatprep.mubr.msk.bf16.mxu1 %vm106_vm1, %v795_v12 }
  0x1e   :  { %754 = vmatmul.mubr.msk.bf16.gmra.mxu0 %vm106_vm1, %v796_v13 }
  0x1f   :  { %776 = vmatmul.mubr.msk.bf16.gmra.mxu1 %vm106_vm1, %v796_v13  ;;  %757 = vmatprep.mubr.msk.bf16.mxu0 %vm106_vm1, %v797_v14 }
  0x20   :  { %779 = vmatprep.mubr.msk.bf16.mxu1 %vm106_vm1, %v797_v14 }
  0x26   :  { %758 = vmatmul.mubr.msk.bf16.gmra.mxu0 %vm106_vm1, %v798_v15 }
  0x27   :  { %780 = vmatmul.mubr.msk.bf16.gmra.mxu1 %vm106_vm1, %v798_v15 }
  0xce   :  { %v747_v16 = vpop.f32.mrf.mxu0 }
  0xcf   :  { %v769_v17 = vpop.f32.mrf.mxu1  ;;  %v178_v23 = vadd.f32 %v747_v16, %v895_v18 }
  0xd0   :  { %v169_v19 = vpop.f32.mrf.mxu0  ;;  %v305_v26 = vadd.f32 %v769_v17, %v900_v20 }
  0xd1   :  { %v296_v21 = vpop.f32.mrf.mxu1  ;;  %v170_v29 = vadd.f32 %v895_v18, %v169_v19 }
  0xd2   :  { %v748_v22 = vpop.f32.mrf.mxu0  ;;  %v297_v33 = vadd.f32 %v900_v20, %v296_v21 }
  0xd3   :  { %v181_v24 = vadd.f32 %v748_v22, %v895_v18  ;;  %v770_v25 = vpop.f32.mrf.mxu1 }
  0xd4   :  { %v308_v27 = vadd.f32 %v770_v25, %v900_v20  ;;  %v172_v28 = vpop.f32.mrf.mxu0 }
  0xd5   :  { %v631_v30 = vpack.c.bf16 %v181_v24, %v178_v23  ;;  %v173_v31 = vadd.f32 %v895_v18, %v172_v28  ;;  %v299_v32 = vpop.f32.mrf.mxu1 }
  0xd6   :  { %v671_v34 = vpack.c.bf16 %v308_v27, %v305_v26  ;;  %v300_v35 = vadd.f32 %v900_v20, %v299_v32  ;;  %v751_v36 = vpop.f32.mrf.mxu0 }
  0xd7   :  { %703 = vst [vmem:[%s987_s5 + $0x8] sm:$0xff] %v631_v30   ;;  %v626_v37 = vpack.c.bf16 %v173_v31, %v170_v29  ;;  %v773_v38 = vpop.f32.mrf.mxu1  ;;  %v194_v43 = vadd.f32 %v751_v36, %v895_v18 }
  0xd8   :  { %710 = vst [vmem:[%s988_s6 + $0x8] sm:$0xff] %v671_v34   ;;  %v666_v39 = vpack.c.bf16 %v300_v35, %v297_v33  ;;  %v185_v40 = vpop.f32.mrf.mxu0  ;;  %v321_v46 = vadd.f32 %v773_v38, %v900_v20 }
  0xd9   :  { %627 = vst [vmem:[%s987_s5] sm:$0xff] %v626_v37   ;;  %v312_v41 = vpop.f32.mrf.mxu1  ;;  %v186_v49 = vadd.f32 %v895_v18, %v185_v40 }
  0xda   :  { %667 = vst [vmem:[%s988_s6] sm:$0xff] %v666_v39   ;;  %v752_v42 = vpop.f32.mrf.mxu0  ;;  %v313_v53 = vadd.f32 %v900_v20, %v312_v41 }
  0xdb   :  { %v197_v44 = vadd.f32 %v752_v42, %v895_v18  ;;  %v774_v45 = vpop.f32.mrf.mxu1 }
  0xdc   :  { %v324_v47 = vadd.f32 %v774_v45, %v900_v20  ;;  %v188_v48 = vpop.f32.mrf.mxu0 }
  0xdd   :  { %v641_v50 = vpack.c.bf16 %v197_v44, %v194_v43  ;;  %v189_v51 = vadd.f32 %v895_v18, %v188_v48  ;;  %v315_v52 = vpop.f32.mrf.mxu1 }
  0xde   :  { %v681_v54 = vpack.c.bf16 %v324_v47, %v321_v46  ;;  %v316_v55 = vadd.f32 %v900_v20, %v315_v52  ;;  %v755_v56 = vpop.f32.mrf.mxu0 }
  0xdf   :  { %705 = vst [vmem:[%s987_s5 + $0x18] sm:$0xff] %v641_v50   ;;  %v636_v57 = vpack.c.bf16 %v189_v51, %v186_v49  ;;  %v777_v58 = vpop.f32.mrf.mxu1  ;;  %v210_v63 = vadd.f32 %v755_v56, %v895_v18 }
  0xe0   :  { %712 = vst [vmem:[%s988_s6 + $0x18] sm:$0xff] %v681_v54   ;;  %v676_v59 = vpack.c.bf16 %v316_v55, %v313_v53  ;;  %v201_v60 = vpop.f32.mrf.mxu0  ;;  %v337_v2 = vadd.f32 %v777_v58, %v900_v20 }
  0xe1   :  { %704 = vst [vmem:[%s987_s5 + $0x10] sm:$0xff] %v636_v57   ;;  %v328_v61 = vpop.f32.mrf.mxu1  ;;  %v202_v5 = vadd.f32 %v895_v18, %v201_v60 }
  0xe2   :  { %711 = vst [vmem:[%s988_s6 + $0x10] sm:$0xff] %v676_v59   ;;  %v756_v62 = vpop.f32.mrf.mxu0  ;;  %v329_v9 = vadd.f32 %v900_v20, %v328_v61 }
  0xe3   :  { %v213_v0 = vadd.f32 %v756_v62, %v895_v18  ;;  %v778_v1 = vpop.f32.mrf.mxu1 }
  0xe4   :  { %v340_v3 = vadd.f32 %v778_v1, %v900_v20  ;;  %v204_v4 = vpop.f32.mrf.mxu0 }
  0xe5   :  { %v651_v6 = vpack.c.bf16 %v213_v0, %v210_v63  ;;  %v205_v7 = vadd.f32 %v895_v18, %v204_v4  ;;  %v331_v8 = vpop.f32.mrf.mxu1 }
  0xe6   :  { %v691_v10 = vpack.c.bf16 %v340_v3, %v337_v2  ;;  %v332_v11 = vadd.f32 %v900_v20, %v331_v8  ;;  %v759_v12 = vpop.f32.mrf.mxu0 }
  0xe7   :  { %707 = vst [vmem:[%s987_s5 + $0x28] sm:$0xff] %v651_v6   ;;  %v646_v13 = vpack.c.bf16 %v205_v7, %v202_v5  ;;  %v781_v14 = vpop.f32.mrf.mxu1  ;;  %v226_v21 = vadd.f32 %v759_v12, %v895_v18 }
  0xe8   :  { %714 = vst [vmem:[%s988_s6 + $0x28] sm:$0xff] %v691_v10   ;;  %v686_v15 = vpack.c.bf16 %v332_v11, %v329_v9  ;;  %v217_v16 = vpop.f32.mrf.mxu0  ;;  %v353_v24 = vadd.f32 %v781_v14, %v900_v20 }
  0xe9   :  { %706 = vst [vmem:[%s987_s5 + $0x20] sm:$0xff] %v646_v13   ;;  %v344_v17 = vpop.f32.mrf.mxu1  ;;  %v218_v27 = vadd.f32 %v895_v18, %v217_v16 }
  0xea   :  { %713 = vst [vmem:[%s988_s6 + $0x20] sm:$0xff] %v686_v15   ;;  %v760_v19 = vpop.f32.mrf.mxu0  ;;  %v345_v31 = vadd.f32 %v900_v20, %v344_v17 }
  0xeb   :  { %v229_v22 = vadd.f32 %v760_v19, %v895_v18  ;;  %v782_v23 = vpop.f32.mrf.mxu1 }
  0xec   :  { %v356_v25 = vadd.f32 %v782_v23, %v900_v20  ;;  %v220_v26 = vpop.f32.mrf.mxu0 }
  0xed   :  { %v661_v28 = vpack.c.bf16 %v229_v22, %v226_v21  ;;  %v221_v29 = vadd.f32 %v895_v18, %v220_v26  ;;  %v347_v30 = vpop.f32.mrf.mxu1 }
  0xee   :  { %v701_v32 = vpack.c.bf16 %v356_v25, %v353_v24  ;;  %v348_v33 = vadd.f32 %v900_v20, %v347_v30 }
  0xef   :  { %709 = vst [vmem:[%s987_s5 + $0x38] sm:$0xff] %v661_v28   ;;  %v656_v34 = vpack.c.bf16 %v221_v29, %v218_v27 }
  0xf0   :  { %716 = vst [vmem:[%s988_s6 + $0x38] sm:$0xff] %v701_v32   ;;  %v696_v35 = vpack.c.bf16 %v348_v33, %v345_v31 }
  0xf1   :  { %708 = vst [vmem:[%s987_s5 + $0x30] sm:$0xff] %v656_v34  }
  0xf2   :  { %715 = vst [vmem:[%s988_s6 + $0x30] sm:$0xff] %v696_v35  }

// kernel: relpn_test_forward.3
= control target key start
LH: loop header
LB: loop body
LE: loop exit
PB: predicated region body
PF: predicated region fallthrough
CT: control target
= control target key end

     0   :  { %v241_v16 = vlaneseq  ;;  %v961_v23 = vmov 0  ;;  %v967_v29 = vmov 0  ;;  %v969_v30 = vmov 0  ;;  %s955_s2 = inlined_call_operand.vmem [shape: bf16[128,128], index: 2, kind: input, shape index: {}]   ;;  %s956_s1 = inlined_call_operand.vmem [shape: bf16[128,128], index: 1, kind: input, shape index: {}]   ;;  %s957_s0 = inlined_call_operand.<no memory space> [shape: s32[1], index: 0, kind: input, shape index: {}]   ;;  %s958_s3 = inlined_call_operand.vmem [shape: bf16[128,128], index: 3, kind: output, shape index: {}]  }
   0x1   :  { %v605_v0 = vld [vmem:[%s955_s2 + $0x38] sm:$0xff]   ;;  %v606_v1 = vld [vmem:[%s955_s2 + $0x30] sm:$0xff]   ;;  %v607_v2 = vld [vmem:[%s955_s2 + $0x28] sm:$0xff]   ;;  %v697_v20 = vstv %s957_s0  ;;  %v975_v36 = vmov 0  ;;  %v977_v38 = vmov 0  ;;  %v980_v40 = vmov 0 }
   0x2   :  { %557 = vmatprep.subr.bf16.mxu0 %v605_v0  ;;  %589 = vmatprep.subr.bf16.mxu1 %v605_v0  ;;  %v613_v3 = vld [vmem:[%s956_s1] sm:$0xff]   ;;  %v609_v6 = vld [vmem:[%s955_s2 + $0x18] sm:$0xff]   ;;  %v610_v7 = vld [vmem:[%s955_s2 + $0x10] sm:$0xff]   ;;  %v689_v17 = vshrl.u32 %v241_v16, 7  ;;  %v692_v19 = vand.u32 127, %v241_v16  ;;  %v983_v41 = vmov 0 }
   0x3   :  { %558 = vmatpush3.bf16.xpose.msra.mxu0 %v605_v0  ;;  %597 = vmatpush3.bf16.xpose.msra.mxu1 %v605_v0  ;;  %v614_v4 = vld [vmem:[%s956_s1 + $0x20] sm:$0xff]   ;;  %v611_v8 = vld [vmem:[%s955_s2 + $0x8] sm:$0xff]   ;;  %v617_v12 = vld [vmem:[%s956_s1 + $0x10] sm:$0xff]   ;;  %v985_v42 = vmov 0 }
   0x4   :  { %559 = vmatprep.subr.bf16.mxu0 %v606_v1  ;;  %590 = vmatprep.subr.bf16.mxu1 %v606_v1  ;;  %v608_v5 = vld [vmem:[%s955_s2 + $0x20] sm:$0xff]   ;;  %v615_v10 = vld [vmem:[%s956_s1 + $0x8] sm:$0xff]   ;;  %v618_v13 = vld [vmem:[%s956_s1 + $0x30] sm:$0xff]   ;;  %v244_v18 = vadd.s32 16, %v689_v17  ;;  %v252_v21 = vadd.s32 80, %v689_v17  ;;  %v250_v22 = vadd.s32 64, %v689_v17  ;;  %vm704_vm1 = vcmp.lt.s32.totalorder %v692_v19, %v697_v20 }
   0x5   :  { %573 = vmatprep.mubr.bf16.mxu0 %v613_v3  ;;  %581 = vmatprep.mubr.bf16.mxu1 %v614_v4  ;;  %v612_v9 = vld [vmem:[%s955_s2] sm:$0xff]   ;;  %v616_v11 = vld [vmem:[%s956_s1 + $0x28] sm:$0xff]   ;;  %v619_v14 = vld [vmem:[%s956_s1 + $0x18] sm:$0xff]   ;;  %v962_v23 = vsel %vm704_vm1, 4294967295, %v961_v23  ;;  %v245_v24 = vadd.s32 24, %v689_v17  ;;  %v253_v25 = vadd.s32 88, %v689_v17  ;;  %vm281_vm3 = vcmp.lt.s32.totalorder %v689_v17, %v697_v20 }
   0x6   :  { %v620_v15 = vld [vmem:[%s956_s1 + $0x38] sm:$0xff]   ;;  %vm283_vm0 = vcmp.lt.s32.totalorder %v244_v18, %v697_v20  ;;  %vm291_vm2 = vcmp.lt.s32.totalorder %v252_v21, %v697_v20  ;;  %v243_v26 = vadd.s32 8, %v689_v17  ;;  %vm289_vm5 = vcmp.lt.s32.totalorder %v250_v22, %v697_v20  ;;  %vm730_vm8 = vmand %vm281_vm3, %vm704_vm1 }
   0x7   :  { %vm716_vm4 = vmand %vm283_vm0, %vm704_vm1  ;;  %vm284_vm7 = vcmp.lt.s32.totalorder %v245_v24, %v697_v20  ;;  %v968_v29 = vsel %vm730_vm8, 4294967295, %v967_v29  ;;  %vm292_vm9 = vcmp.lt.s32.totalorder %v253_v25, %v697_v20  ;;  %v251_v31 = vadd.s32 72, %v689_v17 }
   0x8   :  { %vm723_vm6 = vmand %vm291_vm2, %vm704_vm1  ;;  %vm282_vm11 = vcmp.lt.s32.totalorder %v243_v26, %v697_v20  ;;  %vm316_vm12 = vcmp.ne.s32.totalorder %v244_v18, %v692_v19  ;;  %vm324_vm13 = vcmp.ne.s32.totalorder %v252_v21, %v692_v19  ;;  %vm317_vm15 = vcmp.ne.s32.totalorder %v245_v24, %v692_v19 }
   0x9   :  { %vm737_vm10 = vmand %vm289_vm5, %vm704_vm1  ;;  %v248_v32 = vadd.s32 48, %v689_v17  ;;  %vm325_vm2 = vcmp.ne.s32.totalorder %v253_v25, %v692_v19  ;;  %v256_v33 = vadd.s32 112, %v689_v17  ;;  %vm314_vm3 = vcmp.ne.s32.totalorder %v689_v17, %v692_v19 }
   0xa   :  { %v970_v30 = vsel %vm737_vm10, 4294967295, %v969_v30  ;;  %vm301_vm14 = vmand %vm284_vm7, %vm704_vm1  ;;  %vm322_vm5 = vcmp.ne.s32.totalorder %v250_v22, %v692_v19  ;;  %vm315_vm7 = vcmp.ne.s32.totalorder %v243_v26, %v692_v19  ;;  %v246_v37 = vadd.s32 32, %v689_v17 }
   0xb   :  { %560 = vmatpush3.bf16.xpose.msra.mxu0 %v606_v1  ;;  %598 = vmatpush3.bf16.xpose.msra.mxu1 %v606_v1  ;;  %vm309_vm0 = vmand %vm292_vm9, %vm704_vm1  ;;  %v254_v39 = vadd.s32 96, %v689_v17  ;;  %v249_v43 = vadd.s32 56, %v689_v17  ;;  %v257_v48 = vadd.s32 120, %v689_v17  ;;  %v247_v49 = vadd.s32 40, %v689_v17 }
   0xc   :  { %561 = vmatprep.subr.bf16.mxu0 %v607_v2  ;;  %591 = vmatprep.subr.bf16.mxu1 %v607_v2  ;;  %vm299_vm10 = vmand %vm282_vm11, %vm704_vm1  ;;  %vm290_vm11 = vcmp.lt.s32.totalorder %v251_v31, %v697_v20  ;;  %v255_v55 = vadd.s32 104, %v689_v17 }
   0xd   :  { %vm761_vm8 = vmand %vm716_vm4, %vm316_vm12  ;;  %vm287_vm12 = vcmp.lt.s32.totalorder %v248_v32, %v697_v20 }
   0xe   :  { %vm767_vm9 = vmand %vm723_vm6, %vm324_vm13  ;;  %vm979_vm6 = vnez %v968_v29 }
   0xf   :  { %vm771_vm1 = vmand %vm301_vm14, %vm317_vm15  ;;  %vm982_vm14 = vnez %v970_v30 }
  0x10   :  { %v976_v36 = vsel %vm771_vm1, 4294967295, %v975_v36  ;;  %vm777_vm4 = vmand %vm309_vm0, %vm325_vm2  ;;  %vm295_vm2 = vcmp.lt.s32.totalorder %v256_v33, %v697_v20 }
  0x11   :  { %v978_v38 = vsel %vm777_vm4, 4294967295, %v977_v38  ;;  %vm785_vm13 = vmand %vm979_vm6, %vm314_vm3  ;;  %vm987_vm4 = vnez %v962_v23  ;;  %vm323_vm6 = vcmp.ne.s32.totalorder %v251_v31, %v692_v19 }
  0x12   :  { %v981_v40 = vsel %vm785_vm13, 4294967295, %v980_v40  ;;  %vm791_vm15 = vmand %vm982_vm14, %vm322_vm5  ;;  %vm320_vm5 = vcmp.ne.s32.totalorder %v248_v32, %v692_v19  ;;  %vm328_vm14 = vcmp.ne.s32.totalorder %v256_v33, %v692_v19 }
  0x13   :  { %562 = vmatpush3.bf16.xpose.msra.mxu0 %v607_v2  ;;  %599 = vmatpush3.bf16.xpose.msra.mxu1 %v607_v2  ;;  %v984_v41 = vsel %vm791_vm15, 4294967295, %v983_v41  ;;  %vm795_vm0 = vmand %vm299_vm10, %vm315_vm7  ;;  %vm285_vm10 = vcmp.lt.s32.totalorder %v246_v37, %v697_v20 }
  0x14   :  { %563 = vmatprep.subr.bf16.mxu0 %v608_v5  ;;  %592 = vmatprep.subr.bf16.mxu1 %v608_v5  ;;  %v986_v42 = vsel %vm795_vm0, 4294967295, %v985_v42  ;;  %vm307_vm3 = vmand %vm290_vm11, %vm987_vm4  ;;  %vm293_vm0 = vcmp.lt.s32.totalorder %v254_v39, %v697_v20 }
  0x15   :  { %vm806_vm13 = vmand %vm287_vm12, %vm987_vm4  ;;  %vm288_vm12 = vcmp.lt.s32.totalorder %v249_v43, %v697_v20 }
  0x16   :  { %vm312_vm7 = vmand %vm295_vm2, %vm987_vm4  ;;  %vm318_vm2 = vcmp.ne.s32.totalorder %v246_v37, %v692_v19 }
  0x17   :  { %vm816_vm11 = vmand %vm307_vm3, %vm323_vm6 }
  0x18   :  { %vm302_vm15 = vmand %vm285_vm10, %vm987_vm4  ;;  %vm326_vm10 = vcmp.ne.s32.totalorder %v254_v39, %v692_v19 }
  0x19   :  { %vm828_vm1 = vmand %vm806_vm13, %vm320_vm5  ;;  %vm1003_vm5 = vnez %v978_v38 }
  0x1a   :  { %vm832_vm3 = vmand %vm312_vm7, %vm328_vm14  ;;  %vm286_vm14 = vcmp.lt.s32.totalorder %v247_v49, %v697_v20 }
  0x1b   :  { %564 = vmatpush3.bf16.xpose.msra.mxu0 %v608_v5  ;;  %600 = vmatpush3.bf16.xpose.msra.mxu1 %v608_v5  ;;  %vm838_vm6 = vmand %vm293_vm0, %vm987_vm4  ;;  %vm296_vm0 = vcmp.lt.s32.totalorder %v257_v48, %v697_v20 }
  0x1c   :  { %565 = vmatprep.subr.bf16.mxu0 %v609_v6  ;;  %593 = vmatprep.subr.bf16.mxu1 %v609_v6  ;;  %vm846_vm13 = vmand %vm288_vm12, %vm987_vm4  ;;  %vm1002_vm12 = vnez %v976_v36 }
  0x1d   :  { %vm851_vm7 = vmand %vm302_vm15, %vm318_vm2  ;;  %vm329_vm2 = vcmp.ne.s32.totalorder %v257_v48, %v692_v19 }
  0x1e   :  { %vm867_vm15 = vmand %vm838_vm6, %vm326_vm10  ;;  %vm1009_vm6 = vnez %v981_v40  ;;  %vm1010_vm10 = vnez %v984_v41 }
  0x23   :  { %566 = vmatpush3.bf16.xpose.msra.mxu0 %v609_v6  ;;  %601 = vmatpush3.bf16.xpose.msra.mxu1 %v609_v6 }
  0x24   :  { %567 = vmatprep.subr.bf16.mxu0 %v610_v7  ;;  %594 = vmatprep.subr.bf16.mxu1 %v610_v7 }
  0x2b   :  { %568 = vmatpush3.bf16.xpose.msra.mxu0 %v610_v7  ;;  %602 = vmatpush3.bf16.xpose.msra.mxu1 %v610_v7 }
  0x2c   :  { %569 = vmatprep.subr.bf16.mxu0 %v611_v8  ;;  %595 = vmatprep.subr.bf16.mxu1 %v611_v8 }
  0x33   :  { %570 = vmatpush3.bf16.xpose.msra.mxu0 %v611_v8  ;;  %603 = vmatpush3.bf16.xpose.msra.mxu1 %v611_v8 }
  0x34   :  { %571 = vmatprep.subr.bf16.mxu0 %v612_v9  ;;  %596 = vmatprep.subr.bf16.mxu1 %v612_v9 }
  0x3b   :  { %572 = vmatpush3.bf16.xpose.msra.mxu0 %v612_v9  ;;  %604 = vmatpush3.bf16.xpose.msra.mxu1 %v612_v9 }
  0x42   :  { %574 = vmatmul.mubr.bf16.vlgmr.msra.gmra.mxu0 %v615_v10  ;;  %582 = vmatmul.mubr.bf16.vlgmr.msra.gmra.mxu1 %v616_v11 }
  0x43   :  { %577 = vmatprep.mubr.bf16.mxu0 %v617_v12  ;;  %585 = vmatprep.mubr.bf16.mxu1 %v618_v13 }
  0x4a   :  { %578 = vmatmul.mubr.bf16.gmra.mxu0 %v619_v14  ;;  %586 = vmatmul.mubr.bf16.gmra.mxu1 %v620_v15 }
 0x102   :  { %v575_v45 = vpop.f32.mrf.mxu0  ;;  %v583_v46 = vpop.f32.mrf.mxu1 }
 0x103   :  { %v348_v60 = vsel %vm761_vm8, %v575_v45, -inf  ;;  %v356_v61 = vsel %vm767_vm9, %v583_v46, -inf  ;;  %vm1006_vm8 = vcmp.ne.s32.totalorder %v249_v43, %v692_v19 }
 0x104   :  { %v176_v50 = vpop.f32.mrf.mxu0  ;;  %v208_v51 = vpop.f32.mrf.mxu1  ;;  %vm875_vm9 = vmand %vm846_vm13, %vm1006_vm8 }
 0x105   :  { %v346_v6 = vsel %vm1009_vm6, %v176_v50, -inf  ;;  %v354_v7 = vsel %vm1010_vm10, %v208_v51, -inf  ;;  %vm893_vm13 = vmand %vm296_vm0, %vm987_vm4  ;;  %vm319_vm0 = vcmp.ne.s32.totalorder %v247_v49, %v692_v19  ;;  %vm327_vm6 = vcmp.ne.s32.totalorder %v255_v55, %v692_v19 }
 0x106   :  { %v576_v57 = vpop.f32.mrf.mxu0  ;;  %v584_v58 = vpop.f32.mrf.mxu1 }
 0x107   :  { %v349_v62 = vsel %vm1002_vm12, %v576_v57, -inf  ;;  %v357_v63 = vsel %vm1003_vm5, %v584_v58, -inf  ;;  %vm294_vm5 = vcmp.lt.s32.totalorder %v255_v55, %v697_v20  ;;  %vm1011_vm12 = vnez %v986_v42 }
 0x108   :  { %v502_v1 = vpack.c.bf16 %v349_v62, %v348_v60  ;;  %v522_v2 = vpack.c.bf16 %v357_v63, %v356_v61  ;;  %v179_v3 = vpop.f32.mrf.mxu0  ;;  %v211_v4 = vpop.f32.mrf.mxu1  ;;  %vm311_vm8 = vmand %vm294_vm5, %vm987_vm4 }
 0x109   :  { %v347_v8 = vsel %vm1011_vm12, %v179_v3, -inf  ;;  %v355_v9 = vsel %vm816_vm11, %v211_v4, -inf  ;;  %vm303_vm11 = vmand %vm286_vm14, %vm987_vm4 }
 0x10a   :  { %534 = vst [vmem:[%s958_s3 + $0x8] sm:$0xff] %v502_v1   ;;  %538 = vst [vmem:[%s958_s3 + $0x28] sm:$0xff] %v522_v2   ;;  %v497_v11 = vpack.c.bf16 %v347_v8, %v346_v6  ;;  %v517_v12 = vpack.c.bf16 %v355_v9, %v354_v7  ;;  %v579_v13 = vpop.f32.mrf.mxu0  ;;  %v587_v14 = vpop.f32.mrf.mxu1 }
 0x10b   :  { %vm345_vm14 = vmand %vm893_vm13, %vm329_vm2  ;;  %v352_v22 = vsel %vm828_vm1, %v579_v13, -inf  ;;  %v360_v23 = vsel %vm832_vm3, %v587_v14, -inf }
 0x10c   :  { %498 = vst [vmem:[%s958_s3] sm:$0xff] %v497_v11   ;;  %537 = vst [vmem:[%s958_s3 + $0x20] sm:$0xff] %v517_v12   ;;  %v192_v15 = vpop.f32.mrf.mxu0  ;;  %v224_v16 = vpop.f32.mrf.mxu1 }
 0x10d   :  { %vm921_vm10 = vmand %vm303_vm11, %vm319_vm0  ;;  %v350_v29 = vsel %vm851_vm7, %v192_v15, -inf  ;;  %v358_v30 = vsel %vm867_vm15, %v224_v16, -inf }
 0x10e   :  { %v580_v18 = vpop.f32.mrf.mxu0  ;;  %v588_v20 = vpop.f32.mrf.mxu1  ;;  %vm925_vm4 = vmand %vm311_vm8, %vm327_vm6 }
 0x10f   :  { %v353_v19 = vsel %vm875_vm9, %v580_v18, -inf  ;;  %v361_v24 = vsel %vm345_vm14, %v588_v20, -inf }
 0x110   :  { %v512_v25 = vpack.c.bf16 %v353_v19, %v352_v22  ;;  %v532_v26 = vpack.c.bf16 %v361_v24, %v360_v23  ;;  %v195_v27 = vpop.f32.mrf.mxu0  ;;  %v227_v28 = vpop.f32.mrf.mxu1 }
 0x111   :  { %v351_v31 = vsel %vm921_vm10, %v195_v27, -inf  ;;  %v359_v32 = vsel %vm925_vm4, %v227_v28, -inf }
 0x112   :  { %536 = vst [vmem:[%s958_s3 + $0x18] sm:$0xff] %v512_v25   ;;  %540 = vst [vmem:[%s958_s3 + $0x38] sm:$0xff] %v532_v26   ;;  %v507_v33 = vpack.c.bf16 %v351_v31, %v350_v29  ;;  %v527_v34 = vpack.c.bf16 %v359_v32, %v358_v30 }
 0x114   :  { %535 = vst [vmem:[%s958_s3 + $0x10] sm:$0xff] %v507_v33   ;;  %539 = vst [vmem:[%s958_s3 + $0x30] sm:$0xff] %v527_v34  }

</bundles_post_ra>
